<compile_context>
chip_gen: v7x
topology: tpu7x:2x2x1
jax: 0.10.0
libtpu: 0.0.40
codegen_flags: <defaults>
</compile_context>

<pallas_src>
import math

import jax
import jax.numpy as jnp
from jax.experimental import pallas as pl
from jax.experimental.pallas import tpu as pltpu


def _cdiv(a: int, b: int) -> int:
    return -(-a // b)


def _build_pe(max_len: int, d_model: int) -> jnp.ndarray:
    """Deterministic sinusoidal positional-encoding table, (max_len, d_model) f32."""
    position = jnp.arange(0, max_len, dtype=jnp.float32)[:, None]          # (L, 1)
    div_term = jnp.exp(
        jnp.arange(0, d_model, 2, dtype=jnp.float32) * -(math.log(10000.0) / d_model)
    )                                                                       # (D/2,)
    angles = position * div_term                                            # (L, D/2)
    pe = jnp.zeros((max_len, d_model), dtype=jnp.float32)
    pe = pe.at[:, 0::2].set(jnp.sin(angles))
    pe = pe.at[:, 1::2].set(jnp.cos(angles))
    return pe


def _add_pe_kernel(x_ref, pe_ref, o_ref):
    # x/out tiles: (Bt, tile_r, lanes); pe tile: (1, tile_r, lanes).
    # Pure VPU add; leading-dim broadcast of pe over the batch sub-tile.
    o_ref[...] = x_ref[...] + pe_ref[...]


def _vmem_budget():
    """(working-set budget bytes, vmem_limit_bytes), generation-aware."""
    cap = None
    try:
        cap = getattr(pltpu.get_tpu_info(), "vmem_capacity_bytes", None)
    except Exception:
        cap = None
    if cap is None:
        return 24 << 20, 48 << 20          # unknown: conservative, safe everywhere
    if cap >= (100 << 20):                  # v5e / v6e: 128 MiB physical VMEM
        return 64 << 20, 96 << 20
    return 32 << 20, 48 << 20               # v7x: 64 MiB physical VMEM


def _choose_tiles(B: int, rows: int, lanes: int, itemsize: int, budget_bytes: int):
    """Pick (batch_tile, row_tile) from a byte budget.

    Live VMEM working set: x and out double-buffered (Bt, tr, lanes) tiles plus a
    double-buffered (1, tr, lanes) pe tile -> (4*Bt + 2) * tr * lanes * itemsize.
    """
    align = 8 * max(1, 4 // itemsize)       # sublane packing: 8 f32, 16 bf16, 32 int8
    row_bytes = lanes * itemsize

    def working_set(bt, tr):
        return (4 * bt + 2) * tr * row_bytes

    # Largest batch sub-tile that fits with the minimum row tile.
    min_tr = min(rows, align)
    bt = max(1, B)
    while bt > 1 and working_set(bt, min_tr) > budget_bytes:
        bt = max(1, bt // 2)

    # Grow the row tile to fill the byte budget.
    tr = budget_bytes // ((4 * bt + 2) * row_bytes)
    tr = max(min_tr, min(tr, rows))
    if tr < rows:
        tr = max(align, (tr // align) * align)   # keep (8,128)-layout aligned sub-tiles
        tr = min(tr, rows)

    # Megacore guard (v7x: 2 TCs): keep >= 4 parallel grid steps when the data is
    # big enough that the shrunken tiles are still multi-MiB per step.
    n_b = _cdiv(B, bt)
    n_r = _cdiv(rows, tr)
    if n_b * n_r < 4 and tr > align:
        want_r = _cdiv(4, n_b)
        cap = max(align, (_cdiv(rows, want_r) // align) * align)
        if cap < rows and cap * row_bytes * bt >= (2 << 20):
            tr = min(tr, cap)
    return bt, tr


class PallasPositionalEncoding:
    """Pallas-TPU equivalent of the PyTorch PositionalEncoding module (eval mode)."""

    def __init__(self, d_model: int, dropout: float = 0.1, max_len: int = 5000):
        self.d_model = d_model
        self.dropout_p = dropout
        self.max_len = max_len
        self.pe = _build_pe(max_len, d_model)          # (max_len, d_model) f32 buffer
        self._pe_cache = {}                            # hoisted slice/cast/flatten

    def _prepared_pe(self, S: int, dtype, layout: str, rows: int, lanes: int):
        key = (S, jnp.dtype(dtype).name, layout, rows, lanes)
        if key not in self._pe_cache:
            pe_s = self.pe[:S, :].astype(dtype)
            if layout == "native":
                pe_v = pe_s[None, :, :]                              # (1, S, D)
            elif layout == "flat":
                pe_v = pe_s.reshape(1, rows, lanes)                  # contiguous view
            else:  # "flat_padded"
                flat = pe_s.reshape(-1)
                pad = rows * lanes - flat.shape[0]
                pe_v = jnp.pad(flat, (0, pad)).reshape(1, rows, lanes)
            self._pe_cache[key] = jax.block_until_ready(pe_v)
        return self._pe_cache[key]

    def __call__(self, x: jnp.ndarray) -> jnp.ndarray:
        B, S, D = x.shape
        assert D == self.d_model, f"d_model mismatch: {D} vs {self.d_model}"
        assert S <= self.max_len, f"seq_len={S} exceeds max_len={self.max_len}"
        itemsize = jnp.dtype(x.dtype).itemsize

        # Present a lane-dense (multiple-of-128) last dim to the kernel.
        if D % 128 == 0:
            layout, rows, lanes = "native", S, D
            x_v = x
        elif (S * D) % 128 == 0:
            layout, lanes = "flat", 128
            rows = (S * D) // 128
            x_v = x.reshape(B, rows, lanes)            # contiguous reshape: no copy
        else:
            # Odd shapes: flatten and zero-pad to 128 lanes (unmasked stores),
            # slice the pad off after the kernel.
            layout, lanes = "flat_padded", 128
            rows = _cdiv(S * D, 128)
            pad = rows * lanes - S * D
            x_v = jnp.pad(x.reshape(B, S * D), ((0, 0), (0, pad))).reshape(B, rows, lanes)

        pe_v = self._prepared_pe(S, x.dtype, layout, rows, lanes)

        budget, vmem_limit = _vmem_budget()
        bt, tr = _choose_tiles(B, rows, lanes, itemsize, budget)
        n_r = _cdiv(rows, tr)
        n_b = _cdiv(B, bt)

        total = B * rows * lanes
        cost = pl.CostEstimate(
            flops=total,
            transcendentals=0,
            bytes_accessed=(2 * total + rows * lanes) * itemsize,
        )

        out = pl.pallas_call(
            _add_pe_kernel,
            out_shape=jax.ShapeDtypeStruct((B, rows, lanes), x.dtype),
            grid_spec=pltpu.PrefetchScalarGridSpec(
                num_scalar_prefetch=0,
                # Row tiles OUTER, batch sub-tiles INNER: pe's block index is
                # constant across the inner axis -> one pe fetch per row tile.
                grid=(n_r, n_b),
                in_specs=[
                    pl.BlockSpec((bt, tr, lanes), lambda r, b: (b, r, 0)),
                    pl.BlockSpec((1, tr, lanes), lambda r, b: (0, r, 0)),
                ],
                out_specs=pl.BlockSpec((bt, tr, lanes), lambda r, b: (b, r, 0)),
            ),
            compiler_params=pltpu.CompilerParams(
                dimension_semantics=("parallel", "parallel"),
                vmem_limit_bytes=vmem_limit,
            ),
            cost_estimate=cost,
        )(x_v, pe_v)

        if layout == "flat_padded":
            out = out.reshape(B, rows * lanes)[:, : S * D].reshape(B, S, D)
        else:
            out = out.reshape(B, S, D)

        # Eval-mode dropout is the identity.
        return out


if __name__ == "__main__":
    d_model = 32
    max_len = 64
    dropout_p = 0.1
    B, S = 2, 8

    key = jax.random.PRNGKey(0)
    x = jax.random.normal(key, (B, S, d_model), dtype=jnp.float32)

    module = PallasPositionalEncoding(d_model, dropout_p, max_len)
    out = module(x)
    out = jax.block_until_ready(out)

    # sanity check against plain-JAX reference
    ref = x + module.pe[None, :S, :]
    assert out.shape == (B, S, d_model)
    assert jnp.allclose(out, ref, atol=1e-6), "mismatch vs reference"

    print("KERNEL_OK")
</pallas_src>

<mosaic_0001>
module attributes {stable_mosaic.version = 11 : i64} {
  func.func @_add_pe_kernel(%arg0: i32, %arg1: i32, %arg2: memref<2x2x128xf32, #tpu.memory_space<vmem>>, %arg3: memref<1x2x128xf32, #tpu.memory_space<vmem>>, %arg4: memref<2x2x128xf32, #tpu.memory_space<vmem>>) attributes {dimension_semantics = [#tpu.dimension_semantics<parallel>, #tpu.dimension_semantics<parallel>], iteration_bounds = array<i64: 1, 1>, scalar_prefetch = 0 : i64, scratch_operands = 0 : i64, tpu.core_type = #tpu.core_type<tc>, window_params = [{transform_indices = @transform_0, window_bounds = array<i64: 2, 2, 128>}, {transform_indices = @transform_1, window_bounds = array<i64: 1, 2, 128>}, {transform_indices = @transform_2, window_bounds = array<i64: 2, 2, 128>}]} {
    %c0 = arith.constant 0 : index
    %c0_0 = arith.constant 0 : index
    %c0_1 = arith.constant 0 : index
    %0 = vector.load %arg2[%c0, %c0_0, %c0_1] : memref<2x2x128xf32, #tpu.memory_space<vmem>>, vector<2x2x128xf32>
    %c0_2 = arith.constant 0 : index
    %c0_3 = arith.constant 0 : index
    %c0_4 = arith.constant 0 : index
    %1 = vector.load %arg3[%c0_2, %c0_3, %c0_4] : memref<1x2x128xf32, #tpu.memory_space<vmem>>, vector<1x2x128xf32>
    %2 = vector.broadcast %1 : vector<1x2x128xf32> to vector<2x2x128xf32>
    %3 = arith.addf %0, %2 : vector<2x2x128xf32>
    %c0_5 = arith.constant 0 : index
    %c0_6 = arith.constant 0 : index
    %c0_7 = arith.constant 0 : index
    %4 = vector.load %arg4[%c0_5, %c0_6, %c0_7] : memref<2x2x128xf32, #tpu.memory_space<vmem>>, vector<2x2x128xf32>
    tpu.vector_store %arg4[%c0_5, %c0_6, %c0_7], %3 {strides = array<i32>} : memref<2x2x128xf32, #tpu.memory_space<vmem>>, vector<2x2x128xf32>,
    return
  }
  func.func @transform_0(%arg0: i32, %arg1: i32) -> (i32, i32, i32) {
    %c0_i32 = arith.constant 0 : i32
    %c0_i32_0 = arith.constant 0 : i32
    return %arg1, %arg0, %c0_i32 : i32, i32, i32
  }
  func.func @transform_1(%arg0: i32, %arg1: i32) -> (i32, i32, i32) {
    %c0_i32 = arith.constant 0 : i32
    %c0_i32_0 = arith.constant 0 : i32
    %c0_i32_1 = arith.constant 0 : i32
    return %c0_i32, %arg0, %c0_i32_0 : i32, i32, i32
  }
  func.func @transform_2(%arg0: i32, %arg1: i32) -> (i32, i32, i32) {
    %c0_i32 = arith.constant 0 : i32
    %c0_i32_0 = arith.constant 0 : i32
    return %arg1, %arg0, %c0_i32 : i32, i32, i32
  }
}

</mosaic_0001>

<bundles_post_ra>
// kernel: tpu_custom_call.1
= control target key start
LH: loop header
LB: loop body
LE: loop exit
PB: predicated region body
PF: predicated region fallthrough
CT: control target
= control target key end

     0   :  { %7 = vsyncpa [#allocation3], 0  ;;  %s154_s0 = inlined_call_operand.hbm [shape: f32[2,2,128], index: 0, kind: input, shape index: {}]   ;;  %s155_s1 = inlined_call_operand.vmem [shape: f32[1,2,128], index: 1, kind: input, shape index: {}]   ;;  %s156_s2 = inlined_call_operand.hbm [shape: f32[2,2,128], index: 2, kind: output, shape index: {}]  }
   0x1   :  { %8 = vsyncpa [#allocation4], 0  ;;  %s102_s9 = smov [#allocation2]   ;;  %s54_s13 = scalar_lea.hbm %s154_s0, 64 }
   0x2   :  { %s14_s10 = sshll.u32 %s102_s9, 4  ;;  %p55_p0 = scmp.ne.s32.totalorder %s154_s0, %s54_s13  ;;  %s15_s10 = int_to_ptr.vmem [resolvable:$true] %s14_s10 }
   0x3   :  { %p58_p1 = scmp.lt.u32.totalorder %s54_s13, %s154_s0 }
   0x5   :  { %p60_p2 = pnand %p58_p1, %p55_p0 }
   0x7   :  { %63 = shalt.err (!%p60_p2)
}
   0x8   :  { %s64_s18 = scalar_lea.vmem %s15_s10, 64  ;;  %p69_p4 = scmp.lt.s32.totalorder %s15_s10, %s15_s10 }
   0x9   :  { %p65_p3 = scmp.ne.s32.totalorder %s15_s10, %s64_s18  ;;  %p70_p5 = scmp.lt.s32.totalorder %s64_s18, %s64_s18 }
   0xb   :  { %p71_p6 = por %p70_p5, %p69_p4 }
   0xd   :  { %p72_p7 = pnand %p71_p6, %p65_p3 }
   0xf   :  { %75 = shalt.err (!%p72_p7)
}
  0x10   :  { %s103_s19 = smov 32   ;;  %s104_s20 = smov 2  }
  0x11   :  { %20 = dma.hbm_to_vmem [thread:$0]  %s154_s0, 64, %s15_s10, [#allocation3], %s103_s19, %s103_s19, %s104_s20  }
  0x12   :  { %98 = dma.done.wait [#allocation3], 64  }
  0x13   :  { %99 = vsyncadd [#allocation3], 4294967232  ;;  %s105_s23 = smov [#allocation5]   ;;  %v26_v0 = vld [vmem:[#allocation2] sm:$0x3] }
  0x14   :  { %s38_s24 = sshll.u32 %s105_s23, 4  ;;  %v28_v1 = vld [vmem:[%s155_s1] sm:$0x3]  ;;  %v27_v2 = vld [vmem:[#allocation2 + $0x2] sm:$0x3]  ;;  %s39_s24 = int_to_ptr.vmem [resolvable:$true] %s38_s24 }
  0x15   :  { %v29_v3 = vadd.f32 %v28_v1, %v26_v0  ;;  %v30_v4 = vadd.f32 %v28_v1, %v27_v2  ;;  %s76_s27 = scalar_lea.vmem %s39_s24, 64  ;;  %p81_p9 = scmp.lt.s32.totalorder %s39_s24, %s39_s24 }
  0x16   :  { %p77_p8 = scmp.ne.s32.totalorder %s39_s24, %s76_s27  ;;  %p82_p10 = scmp.lt.s32.totalorder %s76_s27, %s76_s27 }
  0x17   :  { %31 = vst [vmem:[#allocation5] sm:$0x3] %v29_v3  ;;  %32 = vst [vmem:[#allocation5 + $0x2] sm:$0x3] %v30_v4 }
  0x18   :  { %p83_p11 = por %p82_p10, %p81_p9 }
  0x1a   :  { %p84_p12 = pnand %p83_p11, %p77_p8 }
  0x1c   :  { %87 = shalt.err (!%p84_p12)
}
  0x1d   :  { %s88_s29 = scalar_lea.hbm %s156_s2, 64 }
  0x1e   :  { %p89_p13 = scmp.ne.s32.totalorder %s156_s2, %s88_s29  ;;  %p92_p0 = scmp.lt.u32.totalorder %s88_s29, %s156_s2 }
  0x20   :  { %p94_p1 = pnand %p92_p0, %p89_p13 }
  0x22   :  { %97 = shalt.err (!%p94_p1)
}
  0x23   :  { %44 = dma.vmem_to_hbm [thread:$0]  %s39_s24, 64, %s156_s2, [#allocation4], %s103_s19, %s103_s19, %s104_s20  }
  0x24   :  { %100 = dma.done.wait [#allocation4], 64  }
  0x25   :  { %101 = vsyncadd [#allocation4], 4294967232 }
  0x26   :  { %48 = vsyncpa [#allocation3], 1 }
  0x27   :  { %49 = vsyncpa [#allocation4], 1 }

</bundles_post_ra>
